<compile_context>
chip_gen: v6e
topology: v6e:2x2x1
jax: 0.10.0
libtpu: 0.0.40
codegen_flags: <defaults>
</compile_context>

<pallas_src>
import functools
import math

import jax
import jax.numpy as jnp
from jax.experimental import pallas as pl
from jax.experimental.pallas import tpu as pltpu


def _label_smoothing_kernel(x_ref, tgt_ref, msk_ref, out_ref, *,
                            confidence, eps, rt, sr, n_inner, n_rows, ragged):
    outer = pl.program_id(0)
    inner = pl.program_id(1)

    # Zero the resident output block at the start of each outer block's reduction chain.
    @pl.when(inner == 0)
    def _():
        out_ref[...] = jnp.zeros_like(out_ref)

    vocab = x_ref.shape[1]

    # Hoisted once per grid step and reused by every slab iteration.
    col = jax.lax.broadcasted_iota(jnp.int32, (sr, vocab), 1)
    if ragged:
        row_in_slab = jax.lax.broadcasted_iota(jnp.int32, (sr, 1), 0)
        block_row0 = (outer * n_inner + inner) * rt   # intended global row of this block

    @pl.loop(0, rt // sr)
    def _(g):
        r0 = pl.multiple_of(g * sr, 8)
        # Load in the stored dtype (bf16 stays bf16 over HBM/VMEM), upcast in-register.
        x = x_ref[pl.ds(r0, sr), :].astype(jnp.float32)        # (sr, V)
        tgt = tgt_ref[pl.ds(r0, sr), :]                        # (sr, 1) int32
        m = msk_ref[pl.ds(r0, sr), :]                          # (sr, 1) f32

        # Fold the mask into the select operands: one fewer per-element multiply.
        conf_m = m * jnp.float32(confidence)
        eps_m = m * jnp.float32(eps)
        contrib = jnp.where(col == tgt, conf_m, eps_m) * x     # (sr, V) f32

        if ragged:
            # Rows past n_rows (ragged last block / fully-OOB extra block of the 2-way
            # parallel split) hold undefined VMEM data: select them away (NaN-safe).
            valid = (block_row0 + r0 + row_in_slab) < n_rows   # (sr, 1) bool
            contrib = jnp.where(valid, contrib, 0.0)

        # Fold the sr-row slab down to (8, V) in registers (sublane-aligned static
        # slices, plain VPU adds), then touch the VMEM-resident accumulator once.
        folded = contrib[0:8, :]
        for j in range(1, sr // 8):
            folded = folded + contrib[j * 8:(j + 1) * 8, :]
        out_ref[...] += folded


def _xlogx(v):
    return v * math.log(v) if v > 0.0 else 0.0


def _tpu_vmem_bytes():
    """Physical VMEM per core, queried defensively (falls back to the 64 MiB case)."""
    try:
        info = pltpu.get_tpu_info()
        return int(getattr(info, "vmem_capacity_bytes", 64 * 1024 * 1024))
    except Exception:
        return 64 * 1024 * 1024


def label_smoothing_loss(inputs, target, mask, *, smoothing=0.1, block_bytes=None):
    """inputs: (B, T, V) log-probs; target: (B, T_full) int; mask: (B, T_full) float."""
    B, T, V = inputs.shape
    confidence = 1.0 - smoothing
    eps = smoothing / (V - 1)

    # sum_v y*log(y) is identical for every row -> compile-time constant.
    c_const = _xlogx(confidence) + (V - 1) * _xlogx(eps)

    # Glue (trim / flatten) in plain JAX.  NO pads and NO dtype upcast of the big
    # activation: the kernel streams x in its stored dtype and upcasts per slab.
    x = inputs.reshape(-1, V)
    tgt = target[:, :T].reshape(-1, 1).astype(jnp.int32)     # int32 end-to-end
    msk = mask[:, :T].reshape(-1, 1).astype(jnp.float32)
    n_rows = x.shape[0]
    den = jnp.sum(msk)                                       # denominator outside the kernel

    # ---- tiling ----------------------------------------------------------------
    vmem_bytes = _tpu_vmem_bytes()
    if block_bytes is None:
        # ~1/8 of physical VMEM per input block: 16 MiB on 128-MiB parts (v5e/v6e),
        # 8 MiB on 64-MiB parts (v7x).  Double-buffered input + resident output +
        # slab intermediates stay well inside the explicit vmem limit below.
        block_bytes = max(4 * 1024 * 1024, min(16 * 1024 * 1024, vmem_bytes // 8))
    vmem_limit = max(48 * 1024 * 1024, min(96 * 1024 * 1024, (vmem_bytes * 3) // 4))

    itemsize = x.dtype.itemsize
    rows_ceil8 = int(pl.cdiv(n_rows, 8)) * 8

    # Slab rows per inner-loop iteration: keep one slab-sized f32 value at ~<= 16 vregs
    # so the cast/compare/select/multiply chain stays register-resident and fuses.
    sr = max(8, min(64, (16384 // V) // 8 * 8))
    sr = min(sr, rows_ceil8)

    # Row tile: as many slabs as fit the block-byte budget (no artificial 512-row cap),
    # bounded by 4096 rows and by the (8-rounded) total row count.
    rt = (block_bytes // (V * itemsize)) // sr * sr
    rt = max(sr, min((4096 // sr) * sr, rt))
    rt = min(rt, int(pl.cdiv(rows_ceil8, sr)) * sr)

    n_blocks = int(pl.cdiv(n_rows, rt))
    n_outer = 2 if n_blocks >= 2 else 1    # "parallel" outer axis -> both TCs on 2-core chips
    n_inner = int(pl.cdiv(n_blocks, n_outer))
    # True whenever some block reaches past the real rows (ragged tail and/or the odd
    # fully-out-of-bounds block of the 2-way split): the kernel then gates rows by index.
    ragged = (n_outer * n_inner * rt) != n_rows

    kernel = functools.partial(
        _label_smoothing_kernel,
        confidence=confidence, eps=eps,
        rt=rt, sr=sr, n_inner=n_inner, n_rows=n_rows, ragged=ragged)

    partials = pl.pallas_call(
        kernel,
        out_shape=jax.ShapeDtypeStruct((8 * n_outer, V), jnp.float32),
        grid_spec=pltpu.PrefetchScalarGridSpec(
            num_scalar_prefetch=0,
            grid=(n_outer, n_inner),
            in_specs=[
                pl.BlockSpec((rt, V), lambda o, i: (o * n_inner + i, 0)),
                pl.BlockSpec((rt, 1), lambda o, i: (o * n_inner + i, 0)),
                pl.BlockSpec((rt, 1), lambda o, i: (o * n_inner + i, 0)),
            ],
            out_specs=pl.BlockSpec((8, V), lambda o, i: (o, 0)),
        ),
        compiler_params=pltpu.CompilerParams(
            dimension_semantics=("parallel", "arbitrary"),
            vmem_limit_bytes=vmem_limit),
    )(x, tgt, msk)

    s = jnp.sum(partials)                  # final cross-lane reduce (once, in JAX)
    return jnp.float32(c_const) - s / den


def _reference(inputs, target, mask, smoothing):
    B, T, V = inputs.shape
    confidence = 1.0 - smoothing
    eps = smoothing / (V - 1)
    x = inputs.reshape(-1, V).astype(jnp.float32)
    tgt = target[:, :T].reshape(-1).astype(jnp.int32)
    m = mask[:, :T].reshape(-1).astype(jnp.float32)
    true_dist = jnp.full_like(x, eps).at[jnp.arange(x.shape[0]), tgt].set(confidence)
    log_y = jnp.where(true_dist > 0, jnp.log(jnp.maximum(true_dist, 1e-30)), 0.0)
    elem = true_dist * log_y - true_dist * x
    return (elem.sum(1) * m).sum() / m.sum()


if __name__ == "__main__":
    key = jax.random.PRNGKey(0)
    smoothing = 0.1
    k1, k2, k3, k4 = jax.random.split(key, 4)

    # --- test 1: small aligned case (single block, non-ragged path), float32 ---
    B, T, T_full, V = 2, 8, 10, 32
    logits = jax.random.normal(k1, (B, T, V), dtype=jnp.float32)
    log_probs = jax.nn.log_softmax(logits, axis=-1)          # KLDivLoss expects log-probs
    target = jax.random.randint(k2, (B, T_full), 0, V, dtype=jnp.int32)
    lengths = jnp.array([7, 5], dtype=jnp.int32)
    mask = (jnp.arange(T_full)[None, :] < lengths[:, None]).astype(jnp.float32)

    loss = jax.block_until_ready(
        label_smoothing_loss(log_probs, target, mask, smoothing=smoothing))
    ref = _reference(log_probs, target, mask, smoothing)
    assert jnp.allclose(loss, ref, rtol=1e-5, atol=1e-5), (loss, ref)

    # --- test 2: bf16 inputs, multiple row blocks on the 2-way parallel grid, ragged
    # final block and a fully-out-of-bounds block (block_bytes shrunk so the small
    # example still exercises those paths) ---
    B2, T2, T_full2, V2 = 2, 129, 135, 160
    logits2 = jax.random.normal(k3, (B2, T2, V2), dtype=jnp.float32)
    log_probs2 = jax.nn.log_softmax(logits2, axis=-1).astype(jnp.bfloat16)
    target2 = jax.random.randint(k4, (B2, T_full2), 0, V2, dtype=jnp.int32)
    lengths2 = jnp.array([120, 95], dtype=jnp.int32)
    mask2 = (jnp.arange(T_full2)[None, :] < lengths2[:, None]).astype(jnp.float32)

    loss2 = jax.block_until_ready(
        label_smoothing_loss(log_probs2, target2, mask2, smoothing=smoothing,
                             block_bytes=48 * 1024))
    ref2 = _reference(log_probs2, target2, mask2, smoothing)
    assert jnp.allclose(loss2, ref2, rtol=1e-4, atol=1e-4), (loss2, ref2)

    print("KERNEL_OK")
</pallas_src>

<mosaic_0001>
module attributes {stable_mosaic.version = 11 : i64} {
  func.func @_label_smoothing_kernel(%arg0: i32, %arg1: i32, %arg2: memref<16x32xf32, #tpu.memory_space<vmem>>, %arg3: memref<16x1xi32, #tpu.memory_space<vmem>>, %arg4: memref<16x1xf32, #tpu.memory_space<vmem>>, %arg5: memref<8x32xf32, #tpu.memory_space<vmem>>) attributes {dimension_semantics = [#tpu.dimension_semantics<parallel>, #tpu.dimension_semantics<arbitrary>], iteration_bounds = array<i64: 1, 1>, scalar_prefetch = 0 : i64, scratch_operands = 0 : i64, tpu.core_type = #tpu.core_type<tc>, window_params = [{transform_indices = @transform_0, window_bounds = array<i64: 16, 32>}, {transform_indices = @transform_1, window_bounds = array<i64: 16, 1>}, {transform_indices = @transform_2, window_bounds = array<i64: 16, 1>}, {transform_indices = @transform_3, window_bounds = array<i64: 8, 32>}]} {
    %c0_i32 = arith.constant 0 : i32
    %0 = arith.cmpi eq, %arg1, %c0_i32 : i32
    %1 = arith.extui %0 : i1 to i32
    %c0_i32_0 = arith.constant 0 : i32
    %2 = arith.cmpi ne, %1, %c0_i32_0 : i32
    scf.if %2 {
      %cst_11 = arith.constant 0.000000e+00 : f32
      %32 = vector.broadcast %cst_11 : f32 to vector<8x32xf32>
      %c0_12 = arith.constant 0 : index
      %c0_13 = arith.constant 0 : index
      %33 = vector.load %arg5[%c0_12, %c0_13] : memref<8x32xf32, #tpu.memory_space<vmem>>, vector<8x32xf32>
      tpu.vector_store %arg5[%c0_12, %c0_13], %32 {strides = array<i32>} : memref<8x32xf32, #tpu.memory_space<vmem>>, vector<8x32xf32>,
    } else {
    }
    %3 = tpu.iota {dimensions = array<i32: 1>} : vector<16x32xi32>
    %c0_i32_1 = arith.constant 0 : i32
    %c1_i32 = arith.constant 1 : i32
    %4 = arith.muli %c0_i32_1, %c1_i32 : i32
    %c0_i32_2 = arith.constant 0 : i32
    %5 = arith.addi %c0_i32_2, %4 : i32
    %c16_i32 = arith.constant 16 : i32
    %6 = arith.muli %5, %c16_i32 : i32
    %7 = tpu.assume_multiple %6, 8 : i32
    %8 = arith.index_cast %7 : i32 to index
    %c0 = arith.constant 0 : index
    %9 = vector.load %arg2[%8, %c0] : memref<16x32xf32, #tpu.memory_space<vmem>>, vector<16x32xf32>
    %10 = arith.index_cast %7 : i32 to index
    %c0_3 = arith.constant 0 : index
    %11 = vector.load %arg3[%10, %c0_3] : memref<16x1xi32, #tpu.memory_space<vmem>>, vector<16x1xi32>
    %12 = arith.index_cast %7 : i32 to index
    %c0_4 = arith.constant 0 : index
    %13 = vector.load %arg4[%12, %c0_4] : memref<16x1xf32, #tpu.memory_space<vmem>>, vector<16x1xf32>
    %cst = arith.constant 0.899999976 : f32
    %14 = vector.broadcast %cst : f32 to vector<16x1xf32>
    %15 = arith.mulf %13, %14 : vector<16x1xf32>
    %cst_5 = arith.constant 0.0032258064 : f32
    %16 = vector.broadcast %cst_5 : f32 to vector<16x1xf32>
    %17 = arith.mulf %13, %16 : vector<16x1xf32>
    %18 = vector.broadcast %11 : vector<16x1xi32> to vector<16x32xi32>
    %19 = arith.cmpi eq, %3, %18 : vector<16x32xi32>
    %20 = vector.shape_cast %15 : vector<16x1xf32> to vector<16x1xf32>
    %21 = vector.broadcast %20 : vector<16x1xf32> to vector<16x32xf32>
    %22 = vector.shape_cast %17 : vector<16x1xf32> to vector<16x1xf32>
    %23 = vector.broadcast %22 : vector<16x1xf32> to vector<16x32xf32>
    %24 = arith.select %19, %21, %23 : vector<16x32xi1>, vector<16x32xf32>
    %25 = arith.mulf %24, %9 : vector<16x32xf32>
    %26 = vector.extract_strided_slice %25 {offsets = [0, 0], sizes = [8, 32], strides = [1, 1]} : vector<16x32xf32> to vector<8x32xf32>
    %27 = vector.extract_strided_slice %25 {offsets = [8, 0], sizes = [8, 32], strides = [1, 1]} : vector<16x32xf32> to vector<8x32xf32>
    %28 = arith.addf %26, %27 : vector<8x32xf32>
    %c0_6 = arith.constant 0 : index
    %c0_7 = arith.constant 0 : index
    %29 = vector.load %arg5[%c0_6, %c0_7] : memref<8x32xf32, #tpu.memory_space<vmem>>, vector<8x32xf32>
    %30 = arith.addf %29, %28 : vector<8x32xf32>
    %c0_8 = arith.constant 0 : index
    %c0_9 = arith.constant 0 : index
    %31 = vector.load %arg5[%c0_8, %c0_9] : memref<8x32xf32, #tpu.memory_space<vmem>>, vector<8x32xf32>
    tpu.vector_store %arg5[%c0_8, %c0_9], %30 {strides = array<i32>} : memref<8x32xf32, #tpu.memory_space<vmem>>, vector<8x32xf32>,
    %c1_i32_10 = arith.constant 1 : i32
    return
  }
  func.func @transform_0(%arg0: i32, %arg1: i32) -> (i32, i32) {
    %c1_i32 = arith.constant 1 : i32
    %0 = arith.muli %arg0, %c1_i32 : i32
    %1 = arith.addi %0, %arg1 : i32
    %c0_i32 = arith.constant 0 : i32
    %c0_i32_0 = arith.constant 0 : i32
    return %1, %c0_i32 : i32, i32
  }
  func.func @transform_1(%arg0: i32, %arg1: i32) -> (i32, i32) {
    %c1_i32 = arith.constant 1 : i32
    %0 = arith.muli %arg0, %c1_i32 : i32
    %1 = arith.addi %0, %arg1 : i32
    %c0_i32 = arith.constant 0 : i32
    %c0_i32_0 = arith.constant 0 : i32
    return %1, %c0_i32 : i32, i32
  }
  func.func @transform_2(%arg0: i32, %arg1: i32) -> (i32, i32) {
    %c1_i32 = arith.constant 1 : i32
    %0 = arith.muli %arg0, %c1_i32 : i32
    %1 = arith.addi %0, %arg1 : i32
    %c0_i32 = arith.constant 0 : i32
    %c0_i32_0 = arith.constant 0 : i32
    return %1, %c0_i32 : i32, i32
  }
  func.func @transform_3(%arg0: i32, %arg1: i32) -> (i32, i32) {
    %c0_i32 = arith.constant 0 : i32
    %c0_i32_0 = arith.constant 0 : i32
    return %arg0, %c0_i32 : i32, i32
  }
}

</mosaic_0001>

<bundles_post_ra>
// kernel: tpu_custom_call.1
= control target key start
LH: loop header
LB: loop body
LE: loop exit
PB: predicated region body
PF: predicated region fallthrough
CT: control target
= control target key end

     0   :  { %v195_v2 = vmov 0   ;;  %s241_s0 = inlined_call_operand.vmem [shape: f32[16,32], index: 0, kind: input, shape index: {}]   ;;  %s242_s1 = inlined_call_operand.vmem [shape: s32[16,1], index: 1, kind: input, shape index: {}]   ;;  %s243_s2 = inlined_call_operand.vmem [shape: f32[16,1], index: 2, kind: input, shape index: {}]   ;;  %s244_s3 = inlined_call_operand.hbm [shape: f32[8,32], index: 3, kind: output, shape index: {}]  }
   0x1   :  { %v91_v0 = vld [vmem:[%s242_s1] sm:$0xff]  ;;  %171 = vset.pattern.permute.xlu0 %v195_v2  ;;  %172 = vset.pattern.permute.xlu1 %v195_v2  ;;  %v94_v4 = vld [vmem:[%s243_s2 + $0x8] sm:$0xff] }
   0x2   :  { %v93_v1 = vld [vmem:[%s243_s2] sm:$0xff]  ;;  %100 = vperm.xlu0 %171, %v91_v0   ;;  %v92_v5 = vld [vmem:[%s242_s1 + $0x8] sm:$0xff]  ;;  %v96_v6 = vmul.f32 0.9, %v94_v4 }
   0x3   :  { %v95_v3 = vmul.f32 0.9, %v93_v1 }
   0x5   :  { %109 = vperm.xlu1 %172, %v95_v3  }
   0x6   :  { %8 = vsyncpa [#allocation3], 0  ;;  %vm85_vm0 = vcmask 261120   ;;  %v196_v7 = vmov 0.0   ;;  %v97_v8 = vmul.f32 0.0032258064, %v93_v1  ;;  %103 = vperm.xlu0 %171, %v92_v5   ;;  %v87_v11 = vlaneseq }
   0x7   :  { %86 = vst.msk [vmem:[#allocation2] sm:$0xff] %vm85_vm0, %v196_v7  ;;  %v98_v9 = vmul.f32 0.0032258064, %v94_v4  ;;  %v89_v16 = vld [vmem:[%s241_s0] sm:$0xff]  ;;  %v90_v18 = vld [vmem:[%s241_s0 + $0x8] sm:$0xff]  ;;  %s197_s22 = smov [#allocation2]  }
   0x8   :  { %v88_v13 = vand.u32 127, %v87_v11  ;;  %s142_s23 = sshll.u32 %s197_s22, 4  ;;  %s143_s23 = int_to_ptr.vmem [resolvable:$true] %s142_s23 }
   0x9   :  { %114 = vperm.xlu1 %172, %v96_v6   ;;  %s173_s24 = scalar_lea.vmem %s143_s23, 128  ;;  %p178_p1 = scmp.lt.s32.totalorder %s143_s23, %s143_s23 }
   0xa   :  { %119 = vperm.xlu0 %171, %v97_v8   ;;  %p174_p0 = scmp.ne.s32.totalorder %s143_s23, %s173_s24  ;;  %p179_p2 = scmp.lt.s32.totalorder %s173_s24, %s173_s24 }
   0xc   :  { %p180_p3 = por %p179_p2, %p178_p1 }
   0xd   :  { %124 = vperm.xlu1 %172, %v98_v9  }
   0xe   :  { %v132_v24 = vld [vmem:[#allocation2] sm:$0xff]  ;;  %p181_p4 = pnand %p180_p3, %p174_p0 }
  0x7d   :  { %v101_v10 = vpop.permute.xlu0 %100 }
  0x7e   :  { %vm105_vm1 = vcmp.eq.s32.totalorder %v88_v13, %v101_v10 }
  0x80   :  { %v110_v12 = vpop.permute.xlu1 %109 }
  0x81   :  { %v104_v14 = vpop.permute.xlu0 %103 }
  0x82   :  { %vm106_vm2 = vcmp.eq.s32.totalorder %v88_v13, %v104_v14 }
  0x84   :  { %v115_v15 = vpop.permute.xlu1 %114 }
  0x85   :  { %v120_v17 = vpop.permute.xlu0 %119 }
  0x86   :  { %v127_v19 = vsel %vm105_vm1, %v110_v12, %v120_v17 }
  0x87   :  { %v129_v21 = vmul.f32 %v127_v19, %v89_v16 }
  0x88   :  { %v125_v20 = vpop.permute.xlu1 %124 }
  0x89   :  { %v128_v22 = vsel %vm106_vm2, %v115_v15, %v125_v20 }
  0x8a   :  { %v130_v23 = vmul.f32 %v128_v22, %v90_v18 }
  0x8c   :  { %v131_v25 = vadd.f32 %v130_v23, %v129_v21 }
  0x8e   :  { %v133_v26 = vadd.f32 %v132_v24, %v131_v25 }
  0x90   :  { %135 = vst.msk [vmem:[#allocation2] sm:$0xff] %vm85_vm0, %v133_v26 }
  0x91   :  { %184 = shalt.err (!%p181_p4)
}
  0x92   :  { %145 = dma.vmem_to_hbm [thread:$0]  %s143_s23, 128, %s244_s3, [#allocation3]  }
  0x93   :  { %193 = dma.done.wait [#allocation3], 128  }
  0x94   :  { %194 = vsyncadd [#allocation3], 4294967168 }
  0x95   :  { %149 = vsyncpa [#allocation3], 1 }

</bundles_post_ra>
